<compile_context>
chip_gen: v7x
topology: tpu7x:2x2x1
jax: 0.10.0
libtpu: 0.0.40
codegen_flags: <defaults>
</compile_context>

<pallas_src>
import functools

import jax
import jax.numpy as jnp
from jax.experimental import pallas as pl
from jax.experimental.pallas import tpu as pltpu


def _reflect_index(i, n):
    """PyTorch ReflectionPad index for out-of-range i (single reflection)."""
    if i < 0:
        return -i
    if i >= n:
        return 2 * (n - 1) - i
    return i


def _conv_w_kernel(x_ref, w_ref, b_ref, out_ref, patch_ref, *, H, W, K, Cin):
    """Fused reflection-pad + im2col + single MXU matmul + bias for one image."""
    p = K // 2
    HW = H * W

    # (Cin, H*W): channels on sublanes, the whole flattened image on lanes.
    # Tap construction (rolls + selects) runs in f32 (v5e-safe VPU work).
    x = x_ref[0].astype(jnp.float32)

    # Static lane index for boundary masks.  Row masks need only comparisons;
    # column masks need lane % W (a bitwise AND when W is a power of two).
    lane = jax.lax.broadcasted_iota(jnp.int32, (Cin, HW), 1)
    if (W & (W - 1)) == 0:
        col_id = jnp.bitwise_and(lane, W - 1)
    else:
        col_id = lane - (lane // W) * W

    def roll_flat(v, delta):
        # result[i] = v[(i + delta) mod HW]  (shift is static)
        s = (-delta) % HW
        return v if s == 0 else pltpu.roll(v, shift=s, axis=1)

    for dy in range(K):
        sy = dy - p
        # ---- row shift with reflection (shared by every dx of this dy) ----
        if sy == 0:
            r = x
        else:
            r = roll_flat(x, sy * W)
            for h in range(H):
                if 0 <= h + sy < H:
                    continue
                src = _reflect_index(h + sy, H)
                fix = roll_flat(x, (src - h) * W)
                row_mask = (lane >= h * W) & (lane < (h + 1) * W)
                r = jnp.where(row_mask, fix, r)
        for dx in range(K):
            sx = dx - p
            # ---- column shift with reflection ----
            if sx == 0:
                tap = r
            else:
                tap = roll_flat(r, sx)
                for w in range(W):
                    if 0 <= w + sx < W:
                        continue
                    src = _reflect_index(w + sx, W)
                    fix = roll_flat(r, src - w)
                    tap = jnp.where(col_id == w, fix, tap)
            t = dy * K + dx
            # Cin full HW-lane rows -> lane-dense stores into the patch matrix.
            patch_ref[t * Cin:(t + 1) * Cin, :] = tap.astype(patch_ref.dtype)

    # Single MXU matmul producing (Cout, H*W) directly — no output transpose.
    acc = jnp.dot(w_ref[...], patch_ref[...],
                  preferred_element_type=jnp.float32)          # (Cout, HW) f32
    acc = acc + b_ref[...]                                     # f32 bias add
    out_ref[0] = acc.astype(out_ref.dtype)


def conv_w_forward(x_nchw, weight, bias, *, compute_dtype=jnp.bfloat16):
    """Conv_W forward.

    x_nchw: (B, Cin, H, W) f32       (PyTorch NCHW)
    weight: (Cout, Cin, K, K) f32    (PyTorch OIHW)
    bias:   (Cout,) f32
    returns (B, Cout, H, W) f32
    """
    B, Cin, H, W = x_nchw.shape
    Cout, Cin_w, K, K2 = weight.shape
    if K != K2 or K % 2 != 1:
        raise ValueError(f"k must be an odd number (square kernel). k = {K}")
    if Cin_w != Cin:
        raise ValueError("weight / input channel mismatch")
    p = K // 2
    if H <= p or W <= p:
        raise ValueError("ReflectionPad2d requires H, W > k//2")
    HW = H * W

    # Free relayouts in the wrapper: NCHW -> (B, Cin, H*W) is a pure reshape;
    # the weight becomes (Cout, K*K*Cin) with columns ordered (dy, dx, ci) to
    # match the patch-row order inside the kernel.  MXU operands + input go to
    # compute_dtype; the bias stays f32.
    x_flat = x_nchw.reshape(B, Cin, HW).astype(compute_dtype)
    w2 = jnp.transpose(weight, (0, 2, 3, 1)).reshape(Cout, K * K * Cin)
    w2 = w2.astype(compute_dtype)
    b2 = bias.reshape(Cout, 1).astype(jnp.float32)

    kern = functools.partial(_conv_w_kernel, H=H, W=W, K=K, Cin=Cin)

    bytes_accessed = (x_flat.size * x_flat.dtype.itemsize
                      + w2.size * w2.dtype.itemsize
                      + b2.size * 4
                      + B * Cout * HW * 4)

    out_flat = pl.pallas_call(
        kern,
        out_shape=jax.ShapeDtypeStruct((B, Cout, HW), jnp.float32),
        grid=(B,),
        in_specs=[
            pl.BlockSpec((1, Cin, HW), lambda i: (i, 0, 0)),
            pl.BlockSpec((Cout, K * K * Cin), lambda i: (0, 0)),
            pl.BlockSpec((Cout, 1), lambda i: (0, 0)),
        ],
        out_specs=pl.BlockSpec((1, Cout, HW), lambda i: (i, 0, 0)),
        scratch_shapes=[
            pltpu.VMEM((K * K * Cin, HW), compute_dtype),   # im2col patch matrix
        ],
        compiler_params=pltpu.CompilerParams(
            dimension_semantics=("parallel",)),             # batch across TCs (v7x)
        cost_estimate=pl.CostEstimate(
            flops=2 * B * HW * K * K * Cin * Cout,
            transcendentals=0,
            bytes_accessed=bytes_accessed),
    )(x_flat, w2, b2)

    # Free reshape (contiguous split of the last dim) back to NCHW.
    return out_flat.reshape(B, Cout, H, W)


# ---------------- pure-JAX reference (for verification) ----------------
def _ref_conv_w(x_nchw, weight, bias):
    K = weight.shape[-1]
    p = K // 2
    x = jnp.transpose(x_nchw, (0, 2, 3, 1))              # NHWC
    w = jnp.transpose(weight, (2, 3, 1, 0))              # (K, K, Cin, Cout)
    xp = jnp.pad(x, ((0, 0), (p, p), (p, p), (0, 0)), mode="reflect")
    B, H, W, _ = x.shape
    acc = jnp.zeros((B, H, W, weight.shape[0]), jnp.float32)
    for dy in range(K):
        for dx in range(K):
            acc += jnp.einsum("bhwc,cd->bhwd",
                              xp[:, dy:dy + H, dx:dx + W, :], w[dy, dx])
    acc = acc + bias
    return jnp.transpose(acc, (0, 3, 1, 2))              # NCHW


if __name__ == "__main__":
    B, Cin, Cout, H, W, K = 2, 4, 8, 16, 16, 3

    key = jax.random.PRNGKey(0)
    kx, kw, kb = jax.random.split(key, 3)
    x = jax.random.normal(kx, (B, Cin, H, W), jnp.float32)
    weight = 0.1 * jax.random.normal(kw, (Cout, Cin, K, K), jnp.float32)  # OIHW
    bias = 0.05 * jax.random.normal(kb, (Cout,), jnp.float32)

    # Default (bf16 MXU operands, f32 accumulation) and exact-f32 paths.
    out_bf16 = jax.block_until_ready(conv_w_forward(x, weight, bias))
    out_f32 = jax.block_until_ready(
        conv_w_forward(x, weight, bias, compute_dtype=jnp.float32))

    ref = _ref_conv_w(x, weight, bias)

    assert out_bf16.shape == (B, Cout, H, W)
    assert out_f32.shape == (B, Cout, H, W)
    assert jnp.allclose(out_f32, ref, rtol=1e-4, atol=1e-4), "f32 path mismatch"
    assert jnp.allclose(out_bf16, ref, rtol=3e-2, atol=3e-2), "bf16 path mismatch"

    print("KERNEL_OK")
</pallas_src>

<mosaic_0001>
module attributes {stable_mosaic.version = 11 : i64} {
  func.func @_conv_w_kernel(%arg0: i32, %arg1: memref<1x4x256xbf16, #tpu.memory_space<vmem>>, %arg2: memref<8x36xbf16, #tpu.memory_space<vmem>>, %arg3: memref<8x1xf32, #tpu.memory_space<vmem>>, %arg4: memref<1x8x256xf32, #tpu.memory_space<vmem>>, %arg5: memref<36x256xbf16, #tpu.memory_space<vmem>>) attributes {dimension_semantics = [#tpu.dimension_semantics<parallel>], iteration_bounds = array<i64: 2>, scalar_prefetch = 0 : i64, scratch_operands = 1 : i64, tpu.core_type = #tpu.core_type<tc>, window_params = [{transform_indices = @transform_0, window_bounds = array<i64: 1, 4, 256>}, {pipeline_mode = #tpu.pipeline_mode<synchronous>, transform_indices = @transform_1, window_bounds = array<i64: 8, 36>}, {pipeline_mode = #tpu.pipeline_mode<synchronous>, transform_indices = @transform_2, window_bounds = array<i64: 8, 1>}, {transform_indices = @transform_3, window_bounds = array<i64: 1, 8, 256>}]} {
    %c0 = arith.constant 0 : index
    %c0_0 = arith.constant 0 : index
    %c0_1 = arith.constant 0 : index
    %0 = vector.load %arg1[%c0, %c0_0, %c0_1] : memref<1x4x256xbf16, #tpu.memory_space<vmem>>, vector<1x4x256xbf16>
    %1 = vector.shape_cast %0 : vector<1x4x256xbf16> to vector<4x256xbf16>
    %2 = arith.extf %1 : vector<4x256xbf16> to vector<4x256xf32>
    %3 = tpu.iota {dimensions = array<i32: 1>} : vector<4x256xi32>
    %c15_i32 = arith.constant 15 : i32
    %4 = vector.broadcast %c15_i32 : i32 to vector<4x256xi32>
    %5 = arith.andi %3, %4 : vector<4x256xi32>
    %c16_i32 = arith.constant 16 : i32
    %6 = tpu.dynamic_rotate %2 by %c16_i32 dim 1 : vector<4x256xf32>, i32 -> vector<4x256xf32>
    %c240_i32 = arith.constant 240 : i32
    %7 = tpu.dynamic_rotate %2 by %c240_i32 dim 1 : vector<4x256xf32>, i32 -> vector<4x256xf32>
    %c0_i32 = arith.constant 0 : i32
    %8 = vector.broadcast %c0_i32 : i32 to vector<4x256xi32>
    %9 = arith.cmpi sge, %3, %8 : vector<4x256xi32>
    %c16_i32_2 = arith.constant 16 : i32
    %10 = vector.broadcast %c16_i32_2 : i32 to vector<4x256xi32>
    %11 = arith.cmpi slt, %3, %10 : vector<4x256xi32>
    %12 = arith.andi %9, %11 : vector<4x256xi1>
    %13 = arith.select %12, %7, %6 : vector<4x256xi1>, vector<4x256xf32>
    %c1_i32 = arith.constant 1 : i32
    %14 = tpu.dynamic_rotate %13 by %c1_i32 dim 1 : vector<4x256xf32>, i32 -> vector<4x256xf32>
    %c255_i32 = arith.constant 255 : i32
    %15 = tpu.dynamic_rotate %13 by %c255_i32 dim 1 : vector<4x256xf32>, i32 -> vector<4x256xf32>
    %c0_i32_3 = arith.constant 0 : i32
    %16 = vector.broadcast %c0_i32_3 : i32 to vector<4x256xi32>
    %17 = arith.cmpi eq, %5, %16 : vector<4x256xi32>
    %18 = arith.select %17, %15, %14 : vector<4x256xi1>, vector<4x256xf32>
    %19 = arith.truncf %18 : vector<4x256xf32> to vector<4x256xbf16>
    %c0_4 = arith.constant 0 : index
    %c0_5 = arith.constant 0 : index
    %20 = vector.load %arg5[%c0_4, %c0_5] : memref<36x256xbf16, #tpu.memory_space<vmem>>, vector<4x256xbf16>
    tpu.vector_store %arg5[%c0_4, %c0_5], %19 {strides = array<i32>} : memref<36x256xbf16, #tpu.memory_space<vmem>>, vector<4x256xbf16>,
    %21 = arith.truncf %13 : vector<4x256xf32> to vector<4x256xbf16>
    %c4 = arith.constant 4 : index
    %c0_6 = arith.constant 0 : index
    %22 = vector.load %arg5[%c4, %c0_6] : memref<36x256xbf16, #tpu.memory_space<vmem>>, vector<4x256xbf16>
    tpu.vector_store %arg5[%c4, %c0_6], %21 {strides = array<i32>} : memref<36x256xbf16, #tpu.memory_space<vmem>>, vector<4x256xbf16>,
    %c255_i32_7 = arith.constant 255 : i32
    %23 = tpu.dynamic_rotate %13 by %c255_i32_7 dim 1 : vector<4x256xf32>, i32 -> vector<4x256xf32>
    %c1_i32_8 = arith.constant 1 : i32
    %24 = tpu.dynamic_rotate %13 by %c1_i32_8 dim 1 : vector<4x256xf32>, i32 -> vector<4x256xf32>
    %c15_i32_9 = arith.constant 15 : i32
    %25 = vector.broadcast %c15_i32_9 : i32 to vector<4x256xi32>
    %26 = arith.cmpi eq, %5, %25 : vector<4x256xi32>
    %27 = arith.select %26, %24, %23 : vector<4x256xi1>, vector<4x256xf32>
    %28 = arith.truncf %27 : vector<4x256xf32> to vector<4x256xbf16>
    %c8 = arith.constant 8 : index
    %c0_10 = arith.constant 0 : index
    %29 = vector.load %arg5[%c8, %c0_10] : memref<36x256xbf16, #tpu.memory_space<vmem>>, vector<4x256xbf16>
    tpu.vector_store %arg5[%c8, %c0_10], %28 {strides = array<i32>} : memref<36x256xbf16, #tpu.memory_space<vmem>>, vector<4x256xbf16>,
    %c1_i32_11 = arith.constant 1 : i32
    %30 = tpu.dynamic_rotate %2 by %c1_i32_11 dim 1 : vector<4x256xf32>, i32 -> vector<4x256xf32>
    %c255_i32_12 = arith.constant 255 : i32
    %31 = tpu.dynamic_rotate %2 by %c255_i32_12 dim 1 : vector<4x256xf32>, i32 -> vector<4x256xf32>
    %c0_i32_13 = arith.constant 0 : i32
    %32 = vector.broadcast %c0_i32_13 : i32 to vector<4x256xi32>
    %33 = arith.cmpi eq, %5, %32 : vector<4x256xi32>
    %34 = arith.select %33, %31, %30 : vector<4x256xi1>, vector<4x256xf32>
    %35 = arith.truncf %34 : vector<4x256xf32> to vector<4x256xbf16>
    %c12 = arith.constant 12 : index
    %c0_14 = arith.constant 0 : index
    %36 = vector.load %arg5[%c12, %c0_14] : memref<36x256xbf16, #tpu.memory_space<vmem>>, vector<4x256xbf16>
    tpu.vector_store %arg5[%c12, %c0_14], %35 {strides = array<i32>} : memref<36x256xbf16, #tpu.memory_space<vmem>>, vector<4x256xbf16>,
    %37 = arith.truncf %2 : vector<4x256xf32> to vector<4x256xbf16>
    %c16 = arith.constant 16 : index
    %c0_15 = arith.constant 0 : index
    %38 = vector.load %arg5[%c16, %c0_15] : memref<36x256xbf16, #tpu.memory_space<vmem>>, vector<4x256xbf16>
    tpu.vector_store %arg5[%c16, %c0_15], %37 {strides = array<i32>} : memref<36x256xbf16, #tpu.memory_space<vmem>>, vector<4x256xbf16>,
    %c255_i32_16 = arith.constant 255 : i32
    %39 = tpu.dynamic_rotate %2 by %c255_i32_16 dim 1 : vector<4x256xf32>, i32 -> vector<4x256xf32>
    %c1_i32_17 = arith.constant 1 : i32
    %40 = tpu.dynamic_rotate %2 by %c1_i32_17 dim 1 : vector<4x256xf32>, i32 -> vector<4x256xf32>
    %c15_i32_18 = arith.constant 15 : i32
    %41 = vector.broadcast %c15_i32_18 : i32 to vector<4x256xi32>
    %42 = arith.cmpi eq, %5, %41 : vector<4x256xi32>
    %43 = arith.select %42, %40, %39 : vector<4x256xi1>, vector<4x256xf32>
    %44 = arith.truncf %43 : vector<4x256xf32> to vector<4x256xbf16>
    %c20 = arith.constant 20 : index
    %c0_19 = arith.constant 0 : index
    %45 = vector.load %arg5[%c20, %c0_19] : memref<36x256xbf16, #tpu.memory_space<vmem>>, vector<4x256xbf16>
    tpu.vector_store %arg5[%c20, %c0_19], %44 {strides = array<i32>} : memref<36x256xbf16, #tpu.memory_space<vmem>>, vector<4x256xbf16>,
    %c240_i32_20 = arith.constant 240 : i32
    %46 = tpu.dynamic_rotate %2 by %c240_i32_20 dim 1 : vector<4x256xf32>, i32 -> vector<4x256xf32>
    %c16_i32_21 = arith.constant 16 : i32
    %47 = tpu.dynamic_rotate %2 by %c16_i32_21 dim 1 : vector<4x256xf32>, i32 -> vector<4x256xf32>
    %c240_i32_22 = arith.constant 240 : i32
    %48 = vector.broadcast %c240_i32_22 : i32 to vector<4x256xi32>
    %49 = arith.cmpi sge, %3, %48 : vector<4x256xi32>
    %c256_i32 = arith.constant 256 : i32
    %50 = vector.broadcast %c256_i32 : i32 to vector<4x256xi32>
    %51 = arith.cmpi slt, %3, %50 : vector<4x256xi32>
    %52 = arith.andi %49, %51 : vector<4x256xi1>
    %53 = arith.select %52, %47, %46 : vector<4x256xi1>, vector<4x256xf32>
    %c1_i32_23 = arith.constant 1 : i32
    %54 = tpu.dynamic_rotate %53 by %c1_i32_23 dim 1 : vector<4x256xf32>, i32 -> vector<4x256xf32>
    %c255_i32_24 = arith.constant 255 : i32
    %55 = tpu.dynamic_rotate %53 by %c255_i32_24 dim 1 : vector<4x256xf32>, i32 -> vector<4x256xf32>
    %c0_i32_25 = arith.constant 0 : i32
    %56 = vector.broadcast %c0_i32_25 : i32 to vector<4x256xi32>
    %57 = arith.cmpi eq, %5, %56 : vector<4x256xi32>
    %58 = arith.select %57, %55, %54 : vector<4x256xi1>, vector<4x256xf32>
    %59 = arith.truncf %58 : vector<4x256xf32> to vector<4x256xbf16>
    %c24 = arith.constant 24 : index
    %c0_26 = arith.constant 0 : index
    %60 = vector.load %arg5[%c24, %c0_26] : memref<36x256xbf16, #tpu.memory_space<vmem>>, vector<4x256xbf16>
    tpu.vector_store %arg5[%c24, %c0_26], %59 {strides = array<i32>} : memref<36x256xbf16, #tpu.memory_space<vmem>>, vector<4x256xbf16>,
    %61 = arith.truncf %53 : vector<4x256xf32> to vector<4x256xbf16>
    %c28 = arith.constant 28 : index
    %c0_27 = arith.constant 0 : index
    %62 = vector.load %arg5[%c28, %c0_27] : memref<36x256xbf16, #tpu.memory_space<vmem>>, vector<4x256xbf16>
    tpu.vector_store %arg5[%c28, %c0_27], %61 {strides = array<i32>} : memref<36x256xbf16, #tpu.memory_space<vmem>>, vector<4x256xbf16>,
    %c255_i32_28 = arith.constant 255 : i32
    %63 = tpu.dynamic_rotate %53 by %c255_i32_28 dim 1 : vector<4x256xf32>, i32 -> vector<4x256xf32>
    %c1_i32_29 = arith.constant 1 : i32
    %64 = tpu.dynamic_rotate %53 by %c1_i32_29 dim 1 : vector<4x256xf32>, i32 -> vector<4x256xf32>
    %c15_i32_30 = arith.constant 15 : i32
    %65 = vector.broadcast %c15_i32_30 : i32 to vector<4x256xi32>
    %66 = arith.cmpi eq, %5, %65 : vector<4x256xi32>
    %67 = arith.select %66, %64, %63 : vector<4x256xi1>, vector<4x256xf32>
    %68 = arith.truncf %67 : vector<4x256xf32> to vector<4x256xbf16>
    %c32 = arith.constant 32 : index
    %c0_31 = arith.constant 0 : index
    %69 = vector.load %arg5[%c32, %c0_31] : memref<36x256xbf16, #tpu.memory_space<vmem>>, vector<4x256xbf16>
    tpu.vector_store %arg5[%c32, %c0_31], %68 {strides = array<i32>} : memref<36x256xbf16, #tpu.memory_space<vmem>>, vector<4x256xbf16>,
    %c0_32 = arith.constant 0 : index
    %c0_33 = arith.constant 0 : index
    %70 = vector.load %arg2[%c0_32, %c0_33] : memref<8x36xbf16, #tpu.memory_space<vmem>>, vector<8x36xbf16>
    %c0_34 = arith.constant 0 : index
    %c0_35 = arith.constant 0 : index
    %71 = vector.load %arg5[%c0_34, %c0_35] : memref<36x256xbf16, #tpu.memory_space<vmem>>, vector<36x256xbf16>
    %cst = arith.constant dense<0.000000e+00> : vector<8x256xf32>
    %72 = tpu.matmul %70, %71, %cst {dimension_numbers = #tpu.dot_dimension_numbers<[1], [0], [0], [1], [0, 0, 1, 1], [], []>} : vector<8x36xbf16>, vector<36x256xbf16>, vector<8x256xf32> -> vector<8x256xf32>
    %c0_36 = arith.constant 0 : index
    %c0_37 = arith.constant 0 : index
    %73 = vector.load %arg3[%c0_36, %c0_37] : memref<8x1xf32, #tpu.memory_space<vmem>>, vector<8x1xf32>
    %74 = vector.broadcast %73 : vector<8x1xf32> to vector<8x256xf32>
    %75 = arith.addf %72, %74 : vector<8x256xf32>
    %c0_38 = arith.constant 0 : index
    %c0_39 = arith.constant 0 : index
    %c0_40 = arith.constant 0 : index
    %76 = vector.load %arg4[%c0_38, %c0_39, %c0_40] : memref<1x8x256xf32, #tpu.memory_space<vmem>>, vector<1x8x256xf32>
    %77 = vector.shape_cast %76 : vector<1x8x256xf32> to vector<8x256xf32>
    %78 = vector.shape_cast %75 : vector<8x256xf32> to vector<1x8x256xf32>
    tpu.vector_store %arg4[%c0_38, %c0_39, %c0_40], %78 {strides = array<i32>} : memref<1x8x256xf32, #tpu.memory_space<vmem>>, vector<1x8x256xf32>,
    return
  }
  func.func @transform_0(%arg0: i32) -> (i32, i32, i32) {
    %c0_i32 = arith.constant 0 : i32
    %c0_i32_0 = arith.constant 0 : i32
    %c0_i32_1 = arith.constant 0 : i32
    return %arg0, %c0_i32, %c0_i32_0 : i32, i32, i32
  }
  func.func @transform_1(%arg0: i32) -> (i32, i32) {
    %c0_i32 = arith.constant 0 : i32
    %c0_i32_0 = arith.constant 0 : i32
    %c0_i32_1 = arith.constant 0 : i32
    return %c0_i32, %c0_i32_0 : i32, i32
  }
  func.func @transform_2(%arg0: i32) -> (i32, i32) {
    %c0_i32 = arith.constant 0 : i32
    %c0_i32_0 = arith.constant 0 : i32
    %c0_i32_1 = arith.constant 0 : i32
    return %c0_i32, %c0_i32_0 : i32, i32
  }
  func.func @transform_3(%arg0: i32) -> (i32, i32, i32) {
    %c0_i32 = arith.constant 0 : i32
    %c0_i32_0 = arith.constant 0 : i32
    %c0_i32_1 = arith.constant 0 : i32
    return %arg0, %c0_i32, %c0_i32_0 : i32, i32, i32
  }
}

</mosaic_0001>

<bundles_post_ra>
// kernel: tpu_custom_call.1
= control target key start
LH: loop header
LB: loop body
LE: loop exit
PB: predicated region body
PF: predicated region fallthrough
CT: control target
= control target key end

     0   :  { %8 = vsyncpa [#allocation4], 0  ;;  %s931_s0 = inlined_call_operand.vmem [shape: bf16[2,4,256], index: 0, kind: input, shape index: {}]   ;;  %s932_s1 = inlined_call_operand.vmem [shape: bf16[8,36], index: 1, kind: input, shape index: {}]   ;;  %s933_s2 = inlined_call_operand.vmem [shape: f32[8,1], index: 2, kind: input, shape index: {}]   ;;  %s934_s3 = inlined_call_operand.hbm [shape: f32[2,8,256], index: 3, kind: output, shape index: {}]  }
   0x1   :  { %10 = vsyncpa [#allocation4 + $0x1], 0  ;;  %s736_s12 = smov 0   ;;  %s738_s13 = smov 0  }
   0x2   :  { %s740_s14 = smov 0   ;;  %s742_s15 = smov 0  }
   0x3 LB: > { %s757_s16 = sadd.s32 4294967295, %s708_s15   ;;  %s514_s17 = sadd.s32 4294967294, %s708_s15   ;;  %s708_s15 = sphi %s742_s15, %s948_s15   ;;  %s704_s14 = sphi %s740_s14, %s947_s14   ;;  %s700_s13 = sphi %s738_s13, %s946_s13   ;;  %s696_s12 = sphi %s736_s12, %s945_s12  }
   0x4   : > { %s761_s18 = sadd.s32 1, %s708_s15   ;;  %s91_s19 = sadd.s32 1, %s704_s14 }
   0x5   : > { %s88_s20 = ssub.s32 %s708_s15, %s761_s18  ;;  %p101_p0 = scmp.ne.s32.totalorder %s704_s14, %s700_s13 }
   0x6   : > { %p89_p1 = scmp.eq.s32.totalorder %s88_s20, 0  ;;  %p102_p2 = scmp.eq.s32.totalorder %s757_s16, 1 }
   0x7   : > { %p107_p3 = scmp.ne.s32.totalorder %s700_s13, %s696_s12  ;;  %p108_p4 = scmp.eq.s32.totalorder %s514_s17, 1 }
   0x8   : > { %s772_s21 = scalar_select %p89_p1, %s704_s14, %s91_s19  }
   0x9   : > { %p774_p5 = por %p102_p2, %p101_p0  ;;  %p778_p6 = por %p108_p4, %p107_p3 }
   0xa   : > { %p517_p7 = scmp.ge.s32.totalorder %s708_s15, 1  ;;  %p140_p8 = scmp.lt.s32.totalorder %s708_s15, 3 }
   0xc   : > { %p141_p9 = pnand %p517_p7, %p140_p8 }
   0xd   : > { %p164_p10 = scmp.lt.s32.totalorder (!%p141_p9), %s757_s16, 1  ;;  %s710_s29 = smov (!%p141_p9), 16   ;;  %v172_v4 = vlaneseq (!%p141_p9)  ;;  %v714_v49 = vmov (!%p141_p9), 0   ;;  %v355_v50 = vld [vmem:[%s933_s2] sm:$0xff] (!%p141_p9)  ;;  %vm390_vm9 = vcmask (!%p141_p9), 1041408   ;;  %vm386_vm10 = vcmask (!%p141_p9), 293888  }
   0xe   : > { %144 = sbr.rel (%p141_p9) target bundleno = 528 (0x210), region = 32  ;;  %s711_s30 = smov (!%p141_p9), 1   ;;  %429 = vmatprep.mubr.bf16.mxu0 (!%p141_p9), %v714_v49  ;;  %637 = vset.pattern.permute.xlu0 (!%p141_p9), %v714_v49  ;;  %v349_v27 = vld [vmem:[%s932_s1] sm:$0xf] (!%p141_p9) }
   0xf   : > { %s712_s4 = smov (!%p141_p9), 112   ;;  %s713_s5 = smov (!%p141_p9), 127   ;;  %v791_v5 = vand.u32 (!%p141_p9), 127, %v172_v4 }
  0x10   : > { %s161_s10 = sand.u32 (!%p141_p9), 1, %s700_s13   ;;  %s552_s17 = sshll.u32 (!%p141_p9), %s757_s16, 8 }
  0x11   : > { %v174_v6 = vadd.s32 (!%p141_p9), 128, %v791_v5  ;;  %v175_v10 = vand.u32 (!%p141_p9), 15, %v791_v5  ;;  %vm205_vm0 = vcmp.lt.s32.totalorder (!%p141_p9), %v791_v5, 1  ;;  %vm184_vm1 = vcmp.lt.s32.totalorder (!%p141_p9), %v791_v5, 16  ;;  %s518_s11 = sshll.u32 (!%p141_p9), %s161_s10, 4  ;;  %s889_s26 = scalar_lea.hbm (!%p141_p9), %s934_s3, %s552_s17 }
  0x12   : > { %vm191_vm2 = vcmp.lt.s32.totalorder (!%p141_p9), %v791_v5, 112  ;;  %vm212_vm4 = vcmp.lt.s32.totalorder (!%p141_p9), %v791_v5, 127  ;;  %s163_s19 = scalar_lea.vmem (!%p141_p9), [#allocation3], %s518_s11 }
  0x13   : > { %v176_v8 = vand.u32 (!%p141_p9), 15, %v174_v6  ;;  %vm298_vm3 = vcmp.ge.s32.totalorder (!%p141_p9), %v174_v6, 240  ;;  %vm803_vm5 = vcmp.eq.s32.totalorder (!%p141_p9), %v175_v10, 0  ;;  %vm815_vm7 = vcmp.eq.s32.totalorder (!%p141_p9), %v175_v10, 15  ;;  %s455_s20 = sshll.u32 (!%p141_p9), %s163_s19, 4  ;;  %s891_s20 = int_to_ptr.vmem [resolvable:$true] %s455_s20 }
  0x14   : > { %s646_s27 = scalar_lea.vmem (!%p141_p9), %s891_s20, 256 }
  0x15   : > { %s165_s24 = scalar_select %p164_p10, %s757_s16, 1  ;;  %vm807_vm6 = vcmp.eq.s32.totalorder %v176_v8, 0  ;;  %vm819_vm8 = vcmp.eq.s32.totalorder %v176_v8, 15 }
  0x16   : > { %s441_s16 = scalar_lea.sflag [#allocation4], %s161_s10  ;;  %p647_p11 = scmp.ne.s32.totalorder %s891_s20, %s646_s27 }
  0x17   : > { %s543_s25 = sshll.u32 %s165_s24, 2 }
  0x18   : > { %s168_s28 = scalar_lea.vmem %s931_s0, %s543_s25  ;;  %p648_p12 = pnand %p647_p11, %p774_p5 }
  0x19   : > { %v170_v0 = vld [vmem:[%s168_s28] sm:$0xf]  ;;  %s715_s28 = smov [#allocation3]  }
  0x1a   : > { %v171_v1 = vunpack.c.l.bf16 %v170_v0  ;;  %525 = vst.sshfl [vmem:[#allocation2 + $0x10] sm:$0xf pattern:$0x76325410] %v170_v0  ;;  %p649_p13 = pneg %p648_p12 }
  0x1c   : > { %v178_v2 = vcombine.high %v171_v1, %v171_v1 }
  0x1e   : > { %v597_v3 = vpack.i.bf16 %v178_v2, %v171_v1 }
  0x20   : > { %598 = vrot.lane.b32.xlu0 %v597_v3, %s710_s29  ;;  %608 = vrot.lane.b32.xlu1 %v597_v3, %s711_s30  ;;  %s650_s29 = sshll.u32 %s715_s28, 4  ;;  %s651_s29 = int_to_ptr.vmem [resolvable:$false] %s650_s29 }
  0x21   : > { %p653_p0 = scmp.lt.s32.totalorder %s891_s20, %s651_s29 }
  0x24   : > { %603 = vrot.lane.b32.xlu0 %v597_v3, %s712_s4  ;;  %613 = vrot.lane.b32.xlu1 %v597_v3, %s713_s5 }
  0x92   : > { %v599_v7 = vpop.permute.xlu0 %598  ;;  %v609_v9 = vpop.permute.xlu1 %608 }
  0x93   : > { %v611_v11 = vunpack.i.h.bf16 %v609_v9  ;;  %v610_v12 = vunpack.i.l.bf16 %v609_v9  ;;  %v601_v13 = vunpack.i.h.bf16 %v599_v7  ;;  %v600_v14 = vunpack.i.l.bf16 %v599_v7 }
  0x95   : > { %v255_v16 = vsel %vm205_vm0, %v610_v12, %v611_v11  ;;  %v256_v17 = vsel %vm205_vm0, %v611_v11, %v610_v12  ;;  %v185_v25 = vsel %vm184_vm1, %v600_v14, %v601_v13  ;;  %v186_v26 = vsel %vm184_vm1, %v601_v13, %v600_v14 }
  0x96   : > { %v604_v15 = vpop.permute.xlu0 %603  ;;  %v614_v20 = vpop.permute.xlu1 %613 }
  0x97   : > { %v606_v21 = vunpack.i.h.bf16 %v604_v15  ;;  %v605_v22 = vunpack.i.l.bf16 %v604_v15  ;;  %v616_v23 = vunpack.i.h.bf16 %v614_v20  ;;  %v615_v24 = vunpack.i.l.bf16 %v614_v20 }
  0x99   : > { %v192_v29 = vsel %vm191_vm2, %v605_v22, %v606_v21  ;;  %v193_v30 = vsel %vm191_vm2, %v606_v21, %v605_v22  ;;  %v261_v31 = vsel %vm212_vm4, %v615_v24, %v616_v23  ;;  %v262_v32 = vsel %vm212_vm4, %v616_v23, %v615_v24 }
  0x9a   : > { %v199_v33 = vsel %vm184_vm1, %v192_v29, %v186_v26  ;;  %v304_v34 = vsel %vm298_vm3, %v185_v25, %v193_v30  ;;  %v263_v35 = vsel %vm803_vm5, %v261_v31, %v256_v17  ;;  %v264_v36 = vsel %vm807_vm6, %v262_v32, %v255_v16 }
  0x9b   : > { %v622_v37 = vpack.i.bf16 %v185_v25, %v199_v33  ;;  %v545_v38 = vpack.c.bf16 %v185_v25, %v199_v33  ;;  %v550_v39 = vpack.c.bf16 %v304_v34, %v192_v29  ;;  %v547_v40 = vpack.c.bf16 %v264_v36, %v263_v35 }
  0x9c   : > { %v285_v41 = vsel %vm815_vm7, %v256_v17, %v261_v31  ;;  %v286_v43 = vsel %vm819_vm8, %v255_v16, %v262_v32  ;;  %v632_v47 = vpack.i.bf16 %v304_v34, %v192_v29 }
  0x9d   : > { %623 = vrot.lane.b32.xlu1 %v622_v37, %s713_s5  ;;  %v235_v42 = vrot.slane %v545_v38, 6  ;;  %618 = vrot.lane.b32.xlu0 %v622_v37, %s711_s30  ;;  %v335_v44 = vrot.slane %v550_v39, 6  ;;  %v272_v45 = vrot.slane %v547_v40, 6  ;;  %v548_v46 = vpack.c.bf16 %v286_v43, %v285_v41 }
  0x9f   : > { %237 = vst [vmem:[#allocation2] sm:$0xcc] %v235_v42  ;;  %337 = vst [vmem:[#allocation2 + $0x18] sm:$0xcc] %v335_v44  ;;  %v294_v48 = vrot.slane %v548_v46, 6 }
  0xa0   : > { %274 = vst [vmem:[#allocation2 + $0x8] sm:$0xcc] %v272_v45 }
  0xa1   : > { %633 = vrot.lane.b32.xlu1 %v632_v47, %s713_s5  ;;  %628 = vrot.lane.b32.xlu0 %v632_v47, %s711_s30  ;;  %296 = vst [vmem:[#allocation2 + $0x10] sm:$0xcc] %v294_v48  ;;  %s652_s30 = scalar_lea.vmem %s651_s29, 512 }
  0xa2   : > { %p654_p1 = scmp.lt.s32.totalorder %s652_s30, %s646_s27 }
  0xa4   : > { %p655_p2 = por %p654_p1, %p653_p0 }
  0xa5   : > { %358 = vperm.xlu0 %637, %v355_v50  }
  0xa6   : > { %p656_p3 = pnand %p655_p2, %p649_p13 }
 0x10f   : > { %v624_v51 = vpop.permute.xlu1 %623  ;;  %v619_v52 = vpop.permute.xlu0 %618 }
 0x110   : > { %v626_v53 = vunpack.i.h.bf16 %v624_v51  ;;  %v625_v54 = vunpack.i.l.bf16 %v624_v51  ;;  %v621_v55 = vunpack.i.h.bf16 %v619_v52  ;;  %v620_v56 = vunpack.i.l.bf16 %v619_v52 }
 0x112   : > { %v213_v57 = vsel %vm212_vm4, %v625_v54, %v626_v53  ;;  %v214_v58 = vsel %vm212_vm4, %v626_v53, %v625_v54  ;;  %v206_v59 = vsel %vm205_vm0, %v620_v56, %v621_v55  ;;  %v207_v60 = vsel %vm205_vm0, %v621_v55, %v620_v56 }
 0x113   : > { %v217_v61 = vsel %vm803_vm5, %v213_v57, %v207_v60  ;;  %v218_v62 = vsel %vm807_vm6, %v214_v58, %v206_v59  ;;  %v240_v63 = vsel %vm815_vm7, %v207_v60, %v213_v57  ;;  %v241_v0 = vsel %vm819_vm8, %v206_v59, %v214_v58  ;;  %v634_v1 = vpop.permute.xlu1 %633  ;;  %v629_v2 = vpop.permute.xlu0 %628 }
 0x114   : > { %v544_v3 = vpack.c.bf16 %v218_v62, %v217_v61  ;;  %v546_v4 = vpack.c.bf16 %v241_v0, %v240_v63  ;;  %v636_v6 = vunpack.i.h.bf16 %v634_v1  ;;  %v635_v7 = vunpack.i.l.bf16 %v634_v1 }
 0x115   : > { %v631_v8 = vunpack.i.h.bf16 %v629_v2  ;;  %v630_v9 = vunpack.i.l.bf16 %v629_v2 }
 0x116   : > { %227 = vst [vmem:[#allocation2] sm:$0x33] %v544_v3  ;;  %250 = vst [vmem:[#allocation2 + $0x8] sm:$0x33] %v546_v4  ;;  %v315_v10 = vsel %vm212_vm4, %v635_v7, %v636_v6  ;;  %v316_v11 = vsel %vm212_vm4, %v636_v6, %v635_v7 }
 0x117   : > { %v309_v12 = vsel %vm205_vm0, %v630_v9, %v631_v8  ;;  %v310_v13 = vsel %vm205_vm0, %v631_v8, %v630_v9 }
 0x118   : > { %v317_v14 = vsel %vm803_vm5, %v315_v10, %v310_v13  ;;  %v318_v15 = vsel %vm807_vm6, %v316_v11, %v309_v12  ;;  %v338_v16 = vsel %vm815_vm7, %v310_v13, %v315_v10  ;;  %v339_v17 = vsel %vm819_vm8, %v309_v12, %v316_v11 }
 0x119   : > { %v549_v20 = vpack.c.bf16 %v318_v15, %v317_v14  ;;  %v551_v21 = vpack.c.bf16 %v339_v17, %v338_v16 }
 0x11b   : > { %327 = vst [vmem:[#allocation2 + $0x18] sm:$0x33] %v549_v20  ;;  %348 = vst [vmem:[#allocation2 + $0x20] sm:$0x33] %v551_v21 }
 0x11d   : > { %v638_v22 = vld [vmem:[#allocation2 + $0x4] ss:$8 sps:$4 sm:$0xff]   ;;  %v640_v23 = vld [vmem:[#allocation2] ss:$8 sps:$4 sm:$0xff]  }
 0x11e   : > { %397 = vmatprep.subr.bf16.mxu0 %v638_v22 }
 0x11f   : > { %398 = vmatpush1.bf16.msra.mxu0 %v640_v23 }
 0x122   : > { %v641_v5 = vld [vmem:[#allocation2 + $0x14] ss:$8 sps:$4 sm:$0xff]   ;;  %v643_v18 = vld [vmem:[#allocation2 + $0x10] ss:$8 sps:$4 sm:$0xff]   ;;  %v354_v19 = vld [vmem:[#allocation2 + $0x20] sm:$0x33] }
 0x123   : > { %399 = vmatprep.subr.bf16.mxu0 %v641_v5  ;;  %v535_v24 = vcombine.high %v354_v19, %v354_v19  ;;  %v534_v25 = vcombine.low %v354_v19, %v354_v19 }
 0x124   : > { %400 = vmatpush1.bf16.msra.mxu0 %v643_v18  ;;  %v359_v28 = vpop.permute.xlu0 %358 }
 0x125   : > { %536 = vmatprep.subr.msk.bf16.mxu0 %vm390_vm9, %v535_v24  ;;  %v392_v26 = vsel %vm390_vm9, %v534_v25, 0 }
 0x128   : > { %402 = vmatpush1.bf16.msra.mxu0 %v392_v26 }
 0x12b   : > { %537 = vmatmul.mubr.msk.bf16.vlgmr.msra.gmra.mrb[0].mxu0 %vm386_vm10, %v349_v27 }
 0x1fe   : > { %v431_v29 = vpop.f32.mrb[0].mxu0 }
 0x1ff   : > { %v432_v30 = vadd.f32 %v431_v29, %v359_v28  ;;  %v433_v31 = vpop.f32.mrb[1].mxu0 }
 0x200   : > { %v434_v32 = vadd.f32 %v433_v31, %v359_v28  ;;  %v435_v33 = vpop.f32.mrb[2].mxu0 }
 0x201   : > { %438 = vst [vmem:[%s163_s19] sm:$0xff] %v432_v30  ;;  %v436_v34 = vpop.f32.mrb[3].mxu0 }
 0x202   : > { %439 = vst [vmem:[%s163_s19 + $0x8] sm:$0xff] %v434_v32 }
 0x203   : > { %659 = shalt.err (!%p656_p3)
}
 0x204   : > { %s660_s4 = scalar_lea.hbm %s889_s26, 256  ;;  %s664_s7 = scalar_lea.hbm %s934_s3, 512 }
 0x205   : > { %p661_p4 = scmp.ne.s32.totalorder %s889_s26, %s660_s4  ;;  %p665_p9 = scmp.lt.u32.totalorder %s889_s26, %s934_s3 }
 0x206   : > { %p666_p10 = scmp.lt.u32.totalorder %s664_s7, %s660_s4  ;;  %p668_p12 = scmp.lt.u32.totalorder %s660_s4, %s889_s26 }
 0x207   : > { %p662_p7 = pnand %p661_p4, %p774_p5 }
 0x208   : > { %p667_p11 = por %p666_p10, %p665_p9 }
 0x209   : > { %p663_p8 = pneg %p662_p7 }
 0x20a   : > { %p669_p13 = por %p668_p12, %p667_p11 }
 0x20c   : > { %p670_p0 = pnand %p669_p13, %p663_p8 }
 0x20e   : > { %673 = shalt.err (!%p670_p0)
}
 0x20f   : > { %553 = dma.vmem_to_hbm [thread:$0]  (%p774_p5), %s891_s20, 256, %s889_s26, %s441_s16  }
 0x210 PF: > { %p559_p1 = scmp.ge.s32.totalorder %s708_s15, 2  ;;  %s467_s10 = sand.u32 1, %s696_s12  }
 0x211   : > { %s468_s11 = scalar_lea.sflag [#allocation4], %s467_s10 }
 0x212   : > { %p556_p2 = pnand %p559_p1, %p778_p6 }
 0x214   : > { %691 = dma.done.wait (!%p556_p2), %s468_s11, 256  }
 0x215   : > { %693 = vsyncadd (!%p556_p2), %s468_s11, 4294967040  ;;  %p13_p3 = scmp.ge.s32.totalorder %s761_s18, 4   ;;  %s945_s12 = smov %s700_s13 }
 0x216   : > { %s946_s13 = smov %s704_s14  ;;  %s947_s14 = smov %s772_s21 }
 0x217   : > { %s948_s15 = smov %s761_s18  ;;  %15 = sbr.rel (!%p13_p3) target bundleno = 3 (0x3), region = 67 }
 0x21e   :  { %473 = vsyncpa [#allocation4], 1 }
 0x21f   :  { %475 = vsyncpa [#allocation4 + $0x1], 1 }

</bundles_post_ra>
